<compile_context>
chip_gen: v7x
topology: tpu7x:2x2x1
jax: 0.10.0
libtpu: 0.0.40
codegen_flags: <defaults>
</compile_context>

<pallas_src>
import jax
import jax.numpy as jnp
from jax.experimental import pallas as pl
from jax.experimental.pallas import tpu as pltpu

# ---- model configuration ----------------------------------------------------
NOISE_DIM = 8
IN_FEATURES = 16
OUT_FEATURES = 16
LAYER_SIZES = [32, 32]
NONNEG_END_IND = 8

L0, L1 = LAYER_SIZES
CAT_IN = NOISE_DIM + IN_FEATURES

# ---- packed parameter buffer layout (single VMEM-resident operand) -----------
# Weights are stored pre-transposed (out_features x in_features) so the kernel
# computes y^T = W^T @ x^T with the batch on the lane axis.  Every entry gets a
# 32-row slot => every static view below starts at a sublane-tile-aligned row
# and has lane offset 0 (the proven-safe slicing pattern).
PACK_COLS = 32
ROW_WE_N = 0      # (L0, NOISE_DIM)      encoder weight, noise part
ROW_WE_X = 32     # (L0, IN_FEATURES)    encoder weight, x part
ROW_WH = 64       # (L1, L0)             hidden weight
ROW_WD_H = 96     # (OUT, L1)            decoder weight, relu(h) part
ROW_WD_E = 128    # (OUT, L0)            decoder weight, encoded (skip) part
ROW_BE = 160      # (L0, 1)              encoder bias
ROW_BH = 192      # (L1, 1)              hidden bias
ROW_BD = 224      # (OUT, 1)             decoder bias
ROW_AV = 256      # (OUT, 1)             add_vector
ROW_MASK = 288    # (OUT, 1)             1.0 where softplus applies
PACK_ROWS = 320

# ---- batch tiling knobs -------------------------------------------------------
NO_GRID_MAX = 1024   # at/below this batch: single invocation, no grid
BLOCK_N_MAX = 8192   # upper bound on the lane-axis (batch) tile width


# ---- Pallas kernel (feature-major: batch on the lane axis) --------------------
def _generator_kernel(noise_t_ref, x_t_ref, p_ref, o_t_ref):
    f32 = jnp.float32

    # Static, tile-aligned views into the packed parameter buffer (zero-cost).
    we_n = p_ref[ROW_WE_N:ROW_WE_N + L0, 0:NOISE_DIM]
    we_x = p_ref[ROW_WE_X:ROW_WE_X + L0, 0:IN_FEATURES]
    wh = p_ref[ROW_WH:ROW_WH + L1, 0:L0]
    wd_h = p_ref[ROW_WD_H:ROW_WD_H + OUT_FEATURES, 0:L1]
    wd_e = p_ref[ROW_WD_E:ROW_WD_E + OUT_FEATURES, 0:L0]
    be = p_ref[ROW_BE:ROW_BE + L0, 0:1]
    bh = p_ref[ROW_BH:ROW_BH + L1, 0:1]
    bd = p_ref[ROW_BD:ROW_BD + OUT_FEATURES, 0:1]
    av = p_ref[ROW_AV:ROW_AV + OUT_FEATURES, 0:1]
    nn_mask = p_ref[ROW_MASK:ROW_MASK + OUT_FEATURES, 0:1]

    # Encoder Linear(24, 32) on the *un-concatenated* operands: two matmuls
    # (K=8 and K=16) replace the wrapper concat + single K=24 matmul.
    enc_t = (jnp.dot(we_n, noise_t_ref[...], preferred_element_type=f32)
             + jnp.dot(we_x, x_t_ref[...], preferred_element_type=f32)
             + be)                                            # (L0, BLOCK_N)

    # self.layers: ReLU -> Linear(32, 32) -> ReLU.  (forward() applies the
    # activation once more before the skip concat; ReLU is idempotent.)
    h_t = jnp.maximum(enc_t, 0.0)
    h_t = jnp.dot(wh, h_t, preferred_element_type=f32) + bh   # (L1, BLOCK_N)
    h_t = jnp.maximum(h_t, 0.0)

    # Decoder Linear(64, 16) on cat(relu(h), encoded): split matmul, no concat.
    out_t = (jnp.dot(wd_h, h_t, preferred_element_type=f32)
             + jnp.dot(wd_e, enc_t, preferred_element_type=f32)
             + bd)                                            # (OUT, BLOCK_N)

    # Numerically stable softplus, applied to the first NONNEG_END_IND output
    # features (rows) via the pre-baked mask, then add_vector.
    softplus = jnp.log1p(jnp.exp(-jnp.abs(out_t))) + jnp.maximum(out_t, 0.0)
    o_t_ref[...] = jnp.where(nn_mask > 0.0, softplus, out_t) + av


def _round_up(x, m):
    return (x + m - 1) // m * m


@jax.jit
def generator_mlp_forward(noise, x, pack):
    assert noise.shape[1] == NOISE_DIM
    assert x.shape[1] == IN_FEATURES
    batch = noise.shape[0]

    # Feature-major layout: the batch goes on the 128-lane axis so every
    # activation tile is lane-dense and the output store is a full-lane vst.
    noise_t = noise.T.astype(jnp.float32)       # (NOISE_DIM, B)
    x_t = x.T.astype(jnp.float32)               # (IN_FEATURES, B)

    if batch <= NO_GRID_MAX:
        # Small batch: single kernel invocation, full arrays in VMEM, no grid /
        # pipelining bookkeeping.
        out_t = pl.pallas_call(
            _generator_kernel,
            out_shape=jax.ShapeDtypeStruct((OUT_FEATURES, batch), jnp.float32),
            in_specs=[pl.BlockSpec(memory_space=pltpu.MemorySpace.VMEM)] * 3,
            out_specs=pl.BlockSpec(memory_space=pltpu.MemorySpace.VMEM),
        )(noise_t, x_t, pack)
        return out_t.T

    # Large batch: tile the lane (batch) axis.  Block adapted to the batch so
    # the grid always has >= 2 steps (both v7x TensorCores busy) while staying
    # large to amortize per-step overhead; params stay VMEM-resident.
    block_n = max(128, min(BLOCK_N_MAX, (batch // 2 // 128) * 128))
    padded = _round_up(batch, block_n)
    if padded != batch:
        tail = padded - batch
        noise_t = jnp.pad(noise_t, ((0, 0), (0, tail)))
        x_t = jnp.pad(x_t, ((0, 0), (0, tail)))
    grid = (padded // block_n,)

    out_t = pl.pallas_call(
        _generator_kernel,
        out_shape=jax.ShapeDtypeStruct((OUT_FEATURES, padded), jnp.float32),
        grid=grid,
        in_specs=[
            pl.BlockSpec((NOISE_DIM, block_n), lambda i: (0, i)),
            pl.BlockSpec((IN_FEATURES, block_n), lambda i: (0, i)),
            pl.BlockSpec((PACK_ROWS, PACK_COLS), lambda i: (0, 0)),  # resident
        ],
        out_specs=pl.BlockSpec((OUT_FEATURES, block_n), lambda i: (0, i)),
        compiler_params=pltpu.CompilerParams(
            dimension_semantics=("parallel",)),
    )(noise_t, x_t, pack)
    return out_t[:, :batch].T


# ---- parameter setup (deterministic, in-script) -------------------------------
def make_params(key):
    ks = jax.random.split(key, 6)

    def init(k, shape, fan_in):
        bound = float(fan_in) ** -0.5
        return jax.random.uniform(k, shape, jnp.float32, -bound, bound)

    we = init(ks[0], (CAT_IN, L0), CAT_IN)                 # Linear(24, 32), (in,out)
    be = init(ks[1], (L0,), CAT_IN)
    wh = init(ks[2], (L0, L1), L0)                         # Linear(32, 32)
    bh = init(ks[3], (L1,), L0)
    wd = init(ks[4], (L1 + L0, OUT_FEATURES), L1 + L0)     # Linear(64, 16)
    bd = init(ks[5], (OUT_FEATURES,), L1 + L0)
    add_vec = jnp.arange(OUT_FEATURES, dtype=jnp.float32) * 0.1

    pack = jnp.zeros((PACK_ROWS, PACK_COLS), jnp.float32)
    pack = pack.at[ROW_WE_N:ROW_WE_N + L0, :NOISE_DIM].set(we[:NOISE_DIM].T)
    pack = pack.at[ROW_WE_X:ROW_WE_X + L0, :IN_FEATURES].set(we[NOISE_DIM:].T)
    pack = pack.at[ROW_WH:ROW_WH + L1, :L0].set(wh.T)
    pack = pack.at[ROW_WD_H:ROW_WD_H + OUT_FEATURES, :L1].set(wd[:L1].T)
    pack = pack.at[ROW_WD_E:ROW_WD_E + OUT_FEATURES, :L0].set(wd[L1:].T)
    pack = pack.at[ROW_BE:ROW_BE + L0, 0].set(be)
    pack = pack.at[ROW_BH:ROW_BH + L1, 0].set(bh)
    pack = pack.at[ROW_BD:ROW_BD + OUT_FEATURES, 0].set(bd)
    pack = pack.at[ROW_AV:ROW_AV + OUT_FEATURES, 0].set(add_vec)
    pack = pack.at[ROW_MASK:ROW_MASK + NONNEG_END_IND, 0].set(1.0)

    return {
        "pack": pack,
        # natural-layout copies, used only by the pure-JAX reference
        "we": we, "be": be.reshape(1, -1),
        "wh": wh, "bh": bh.reshape(1, -1),
        "wd": wd, "bd": bd.reshape(1, -1),
        "add_vec": add_vec.reshape(1, -1),
    }


# ---- pure-JAX reference (mirrors PyTorch eval semantics) -----------------------
def reference_forward(noise, x, params):
    hp = jax.lax.Precision.HIGHEST
    xin = jnp.concatenate([noise, x], axis=1)
    encoded = jnp.dot(xin, params["we"], precision=hp) + params["be"]
    h = jax.nn.relu(encoded)
    h = jnp.dot(h, params["wh"], precision=hp) + params["bh"]
    h = jax.nn.relu(h)
    cat_ = jnp.concatenate([jax.nn.relu(h), encoded], axis=1)
    out = jnp.dot(cat_, params["wd"], precision=hp) + params["bd"]
    result = jnp.concatenate(
        [jax.nn.softplus(out[:, :NONNEG_END_IND]), out[:, NONNEG_END_IND:]],
        axis=1)
    return result + params["add_vec"]


# ---- main ----------------------------------------------------------------------
if __name__ == "__main__":
    key = jax.random.PRNGKey(0)
    k_params, k1, k2, k3, k4, k5, k6 = jax.random.split(key, 7)

    params = make_params(k_params)
    pack = params["pack"]

    # 1) Small batch: no-grid path.
    B0 = 8
    noise = jax.random.normal(k1, (B0, NOISE_DIM), jnp.float32)
    x = jax.random.normal(k2, (B0, IN_FEATURES), jnp.float32)
    out = jax.block_until_ready(generator_mlp_forward(noise, x, pack))
    ref = reference_forward(noise, x, params)
    assert out.shape == (B0, OUT_FEATURES)
    assert jnp.allclose(out, ref, rtol=1e-5, atol=1e-5), "small-batch mismatch"

    # 2) Large batch, exact block multiple: 2-step "parallel" grid (block 2048).
    B1 = 4096
    noise_b = jax.random.normal(k3, (B1, NOISE_DIM), jnp.float32)
    x_b = jax.random.normal(k4, (B1, IN_FEATURES), jnp.float32)
    out_b = jax.block_until_ready(generator_mlp_forward(noise_b, x_b, pack))
    ref_b = reference_forward(noise_b, x_b, params)
    assert out_b.shape == (B1, OUT_FEATURES)
    assert jnp.allclose(out_b, ref_b, rtol=1e-5, atol=1e-5), "big-batch mismatch"

    # 3) Large batch that is NOT a block multiple: exercises the padded tail.
    B2 = 3000
    noise_c = jax.random.normal(k5, (B2, NOISE_DIM), jnp.float32)
    x_c = jax.random.normal(k6, (B2, IN_FEATURES), jnp.float32)
    out_c = jax.block_until_ready(generator_mlp_forward(noise_c, x_c, pack))
    ref_c = reference_forward(noise_c, x_c, params)
    assert out_c.shape == (B2, OUT_FEATURES)
    assert jnp.allclose(out_c, ref_c, rtol=1e-5, atol=1e-5), "ragged-batch mismatch"

    print("KERNEL_OK")
</pallas_src>

<mosaic_0001>
module attributes {stable_mosaic.version = 11 : i64} {
  func.func @_generator_kernel(%arg0: memref<8x8xf32, #tpu.memory_space<vmem>>, %arg1: memref<16x8xf32, #tpu.memory_space<vmem>>, %arg2: memref<320x32xf32, #tpu.memory_space<vmem>>, %arg3: memref<16x8xf32, #tpu.memory_space<vmem>>) attributes {dimension_semantics = [], scalar_prefetch = 0 : i64, scratch_operands = 0 : i64, tpu.core_type = #tpu.core_type<tc>} {
    %c0 = arith.constant 0 : index
    %c0_0 = arith.constant 0 : index
    %0 = vector.load %arg2[%c0, %c0_0] : memref<320x32xf32, #tpu.memory_space<vmem>>, vector<32x8xf32>
    %c32 = arith.constant 32 : index
    %c0_1 = arith.constant 0 : index
    %1 = vector.load %arg2[%c32, %c0_1] : memref<320x32xf32, #tpu.memory_space<vmem>>, vector<32x16xf32>
    %c64 = arith.constant 64 : index
    %c0_2 = arith.constant 0 : index
    %2 = vector.load %arg2[%c64, %c0_2] : memref<320x32xf32, #tpu.memory_space<vmem>>, vector<32x32xf32>
    %c96 = arith.constant 96 : index
    %c0_3 = arith.constant 0 : index
    %3 = vector.load %arg2[%c96, %c0_3] : memref<320x32xf32, #tpu.memory_space<vmem>>, vector<16x32xf32>
    %c128 = arith.constant 128 : index
    %c0_4 = arith.constant 0 : index
    %4 = vector.load %arg2[%c128, %c0_4] : memref<320x32xf32, #tpu.memory_space<vmem>>, vector<16x32xf32>
    %c160 = arith.constant 160 : index
    %c0_5 = arith.constant 0 : index
    %5 = vector.load %arg2[%c160, %c0_5] : memref<320x32xf32, #tpu.memory_space<vmem>>, vector<32x1xf32>
    %c192 = arith.constant 192 : index
    %c0_6 = arith.constant 0 : index
    %6 = vector.load %arg2[%c192, %c0_6] : memref<320x32xf32, #tpu.memory_space<vmem>>, vector<32x1xf32>
    %c224 = arith.constant 224 : index
    %c0_7 = arith.constant 0 : index
    %7 = vector.load %arg2[%c224, %c0_7] : memref<320x32xf32, #tpu.memory_space<vmem>>, vector<16x1xf32>
    %c256 = arith.constant 256 : index
    %c0_8 = arith.constant 0 : index
    %8 = vector.load %arg2[%c256, %c0_8] : memref<320x32xf32, #tpu.memory_space<vmem>>, vector<16x1xf32>
    %c288 = arith.constant 288 : index
    %c0_9 = arith.constant 0 : index
    %9 = vector.load %arg2[%c288, %c0_9] : memref<320x32xf32, #tpu.memory_space<vmem>>, vector<16x1xf32>
    %c0_10 = arith.constant 0 : index
    %c0_11 = arith.constant 0 : index
    %10 = vector.load %arg0[%c0_10, %c0_11] : memref<8x8xf32, #tpu.memory_space<vmem>>, vector<8x8xf32>
    %cst = arith.constant dense<0.000000e+00> : vector<32x8xf32>
    %11 = tpu.matmul %0, %10, %cst {dimension_numbers = #tpu.dot_dimension_numbers<[1], [0], [0], [1], [0, 0, 1, 1], [], []>} : vector<32x8xf32>, vector<8x8xf32>, vector<32x8xf32> -> vector<32x8xf32>
    %c0_12 = arith.constant 0 : index
    %c0_13 = arith.constant 0 : index
    %12 = vector.load %arg1[%c0_12, %c0_13] : memref<16x8xf32, #tpu.memory_space<vmem>>, vector<16x8xf32>
    %cst_14 = arith.constant dense<0.000000e+00> : vector<32x8xf32>
    %13 = tpu.matmul %1, %12, %cst_14 {dimension_numbers = #tpu.dot_dimension_numbers<[1], [0], [0], [1], [0, 0, 1, 1], [], []>} : vector<32x16xf32>, vector<16x8xf32>, vector<32x8xf32> -> vector<32x8xf32>
    %14 = arith.addf %11, %13 : vector<32x8xf32>
    %15 = vector.broadcast %5 : vector<32x1xf32> to vector<32x8xf32>
    %16 = arith.addf %14, %15 : vector<32x8xf32>
    %cst_15 = arith.constant 0.000000e+00 : f32
    %17 = vector.broadcast %cst_15 : f32 to vector<32x8xf32>
    %18 = arith.maximumf %16, %17 : vector<32x8xf32>
    %cst_16 = arith.constant dense<0.000000e+00> : vector<32x8xf32>
    %19 = tpu.matmul %2, %18, %cst_16 {dimension_numbers = #tpu.dot_dimension_numbers<[1], [0], [0], [1], [0, 0, 1, 1], [], []>} : vector<32x32xf32>, vector<32x8xf32>, vector<32x8xf32> -> vector<32x8xf32>
    %20 = vector.broadcast %6 : vector<32x1xf32> to vector<32x8xf32>
    %21 = arith.addf %19, %20 : vector<32x8xf32>
    %cst_17 = arith.constant 0.000000e+00 : f32
    %22 = vector.broadcast %cst_17 : f32 to vector<32x8xf32>
    %23 = arith.maximumf %21, %22 : vector<32x8xf32>
    %cst_18 = arith.constant dense<0.000000e+00> : vector<16x8xf32>
    %24 = tpu.matmul %3, %23, %cst_18 {dimension_numbers = #tpu.dot_dimension_numbers<[1], [0], [0], [1], [0, 0, 1, 1], [], []>} : vector<16x32xf32>, vector<32x8xf32>, vector<16x8xf32> -> vector<16x8xf32>
    %cst_19 = arith.constant dense<0.000000e+00> : vector<16x8xf32>
    %25 = tpu.matmul %4, %16, %cst_19 {dimension_numbers = #tpu.dot_dimension_numbers<[1], [0], [0], [1], [0, 0, 1, 1], [], []>} : vector<16x32xf32>, vector<32x8xf32>, vector<16x8xf32> -> vector<16x8xf32>
    %26 = arith.addf %24, %25 : vector<16x8xf32>
    %27 = vector.broadcast %7 : vector<16x1xf32> to vector<16x8xf32>
    %28 = arith.addf %26, %27 : vector<16x8xf32>
    %29 = math.absf %28 : vector<16x8xf32>
    %cst_20 = arith.constant 0.000000e+00 : f32
    %30 = vector.broadcast %cst_20 : f32 to vector<16x8xf32>
    %31 = arith.subf %30, %29 : vector<16x8xf32>
    %32 = math.exp %31 : vector<16x8xf32>
    %33 = math.log1p %32 : vector<16x8xf32>
    %cst_21 = arith.constant 0.000000e+00 : f32
    %34 = vector.broadcast %cst_21 : f32 to vector<16x8xf32>
    %35 = arith.maximumf %28, %34 : vector<16x8xf32>
    %36 = arith.addf %33, %35 : vector<16x8xf32>
    %cst_22 = arith.constant 0.000000e+00 : f32
    %37 = vector.broadcast %cst_22 : f32 to vector<16x1xf32>
    %38 = arith.cmpf ogt, %9, %37 : vector<16x1xf32>
    %39 = vector.shape_cast %38 : vector<16x1xi1> to vector<16x1xi1>
    %40 = vector.broadcast %39 : vector<16x1xi1> to vector<16x8xi1>
    %41 = arith.select %40, %36, %28 : vector<16x8xi1>, vector<16x8xf32>
    %42 = vector.broadcast %8 : vector<16x1xf32> to vector<16x8xf32>
    %43 = arith.addf %41, %42 : vector<16x8xf32>
    %c0_23 = arith.constant 0 : index
    %c0_24 = arith.constant 0 : index
    %44 = vector.load %arg3[%c0_23, %c0_24] : memref<16x8xf32, #tpu.memory_space<vmem>>, vector<16x8xf32>
    tpu.vector_store %arg3[%c0_23, %c0_24], %43 {strides = array<i32>} : memref<16x8xf32, #tpu.memory_space<vmem>>, vector<16x8xf32>,
    return
  }
}

</mosaic_0001>

<bundles_post_ra>
// kernel: generator_mlp_forward.1
= control target key start
LH: loop header
LB: loop body
LE: loop exit
PB: predicated region body
PF: predicated region fallthrough
CT: control target
= control target key end

     0   :  { %vm145_vm0 = vcmask 64512   ;;  %vm47_vm1 = vcmask 130048   ;;  %v775_v3 = vmov 0   ;;  %vm291_vm4 = vcmask 261120   ;;  %s919_s1 = inlined_call_operand.vmem [shape: f32[16,8], index: 1, kind: input, shape index: {}]   ;;  %s920_s0 = inlined_call_operand.vmem [shape: f32[8,8], index: 0, kind: input, shape index: {}]   ;;  %s921_s2 = inlined_call_operand.vmem [shape: f32[320,32], index: 2, kind: input, shape index: {}]   ;;  %s922_s3 = inlined_call_operand.vmem [shape: f32[16,8], index: 3, kind: output, shape index: {}]  }
   0x1   :  { %v45_v0 = vld [vmem:[%s919_s1] sm:$0xff]  ;;  %v46_v1 = vld [vmem:[%s919_s1 + $0x8] sm:$0xff]  ;;  %765 = vset.pattern.permute.xlu0 %v775_v3  ;;  %766 = vset.pattern.permute.xlu1 %v775_v3  ;;  %v16_v8 = vld [vmem:[%s921_s2 + $0x10] sm:$0xff] }
   0x2   :  { %v44_v2 = vld [vmem:[%s920_s0] sm:$0xff]  ;;  %v730_v4 = vpack.c.bf16 %v46_v1, %v45_v0  ;;  %v15_v7 = vld [vmem:[%s921_s2 + $0x8] sm:$0xff]  ;;  %v32_v11 = vld [vmem:[%s921_s2 + $0xb0] sm:$0xff] }
   0x3   :  { %686 = vmatprep.subr.mxu1 %v44_v2  ;;  %v14_v5 = vld [vmem:[%s921_s2] sm:$0xff]  ;;  %v19_v10 = vld [vmem:[%s921_s2 + $0x28] sm:$0xff]  ;;  %v20_v12 = vld [vmem:[%s921_s2 + $0x30] sm:$0xff]  ;;  %255 = vperm.xlu1 %766, %v32_v11  }
   0x4   :  { %v18_v6 = vld [vmem:[%s921_s2 + $0x20] sm:$0xff]  ;;  %687 = vmatpush3.msra.mxu1 %v44_v2  ;;  %688 = vmatprep.mubr.msk.f32.mxu1 %vm145_vm0, %v14_v5  ;;  %v17_v13 = vld [vmem:[%s921_s2 + $0x18] sm:$0xff]  ;;  %v31_v14 = vld [vmem:[%s921_s2 + $0xa8] sm:$0xff] }
   0x5   :  { %731 = vmatprep.subr.bf16.mxu0 %v730_v4  ;;  %680 = vmatprep.mubr.msk.f32.mxu0 %vm47_vm1, %v18_v6  ;;  %v30_v9 = vld [vmem:[%s921_s2 + $0xa0] sm:$0xff]  ;;  %v33_v15 = vld [vmem:[%s921_s2 + $0xb8] sm:$0xff]  ;;  %v35_v18 = vld [vmem:[%s921_s2 + $0xc8] sm:$0xff] }
   0x6   :  { %733 = vmatpush3.bf16.msra.mxu0 %v730_v4  ;;  %689 = vmatmul.mubr.msk.f32.vlgmr.msra.gmra.mrb[0].mxu1 %vm145_vm0, %v15_v7  ;;  %v21_v16 = vld [vmem:[%s921_s2 + $0x38] sm:$0xff]  ;;  %v34_v17 = vld [vmem:[%s921_s2 + $0xc0] sm:$0xff]  ;;  %v36_v19 = vld [vmem:[%s921_s2 + $0xd0] sm:$0xff] }
   0x7   :  { %691 = vmatprep.mubr.msk.f32.mxu1 %vm145_vm0, %v16_v8  ;;  %245 = vperm.xlu0 %765, %v30_v9   ;;  %v37_v20 = vld [vmem:[%s921_s2 + $0xd8] sm:$0xff]  ;;  %v42_v21 = vld [vmem:[%s921_s2 + $0x120] sm:$0xff]  ;;  %v43_v22 = vld [vmem:[%s921_s2 + $0x128] sm:$0xff] }
   0x8   :  { %260 = vperm.xlu1 %766, %v33_v15   ;;  %v38_v23 = vld [vmem:[%s921_s2 + $0xe0] sm:$0xff]  ;;  %v39_v24 = vld [vmem:[%s921_s2 + $0xe8] sm:$0xff]  ;;  %vm597_vm2 = vcmp.gt.f32.partialorder %v42_v21, 0.0  ;;  %vm598_vm3 = vcmp.gt.f32.partialorder %v43_v22, 0.0  ;;  %v24_v59 = vld [vmem:[%s921_s2 + $0x50] sm:$0xff] }
   0x9   :  { %681 = vmatmul.mubr.msk.f32.vlgmr.msra.gmra.mrb[0].mxu0 %vm47_vm1, %v19_v10  ;;  %v599_v25 = vsel %vm597_vm2, 1, %v775_v3  ;;  %v600_v26 = vsel %vm598_vm3, 1, %v775_v3  ;;  %v40_v27 = vld [vmem:[%s921_s2 + $0x100] sm:$0xff]  ;;  %v41_v28 = vld [vmem:[%s921_s2 + $0x108] sm:$0xff]  ;;  %v25_v60 = vld [vmem:[%s921_s2 + $0x58] sm:$0xff] }
   0xa   :  { %683 = vmatprep.mubr.msk.f32.mxu0 %vm47_vm1, %v20_v12  ;;  %692 = vmatmul.mubr.msk.f32.gmra.mrb[2].mxu1 %vm145_vm0, %v17_v13  ;;  %v22_v29 = vld [vmem:[%s921_s2 + $0x40] sm:$0xff]  ;;  %v23_v58 = vld [vmem:[%s921_s2 + $0x48] sm:$0xff] }
   0xb   :  { %250 = vperm.xlu0 %765, %v31_v14   ;;  %702 = vmatprep.mubr.msk.f32.mxu1 %vm291_vm4, %v22_v29  ;;  %v28_v61 = vld [vmem:[%s921_s2 + $0x80] sm:$0xff]  ;;  %v29_v63 = vld [vmem:[%s921_s2 + $0x88] sm:$0xff] }
   0xc   :  { %278 = vperm.xlu1 %766, %v35_v18   ;;  %v26_v62 = vld [vmem:[%s921_s2 + $0x60] sm:$0xff]  ;;  %v27_v18 = vld [vmem:[%s921_s2 + $0x68] sm:$0xff] }
   0xd   :  { %684 = vmatmul.mubr.msk.f32.gmra.mrb[2].mxu0 %vm47_vm1, %v21_v16 }
   0xe   :  { %716 = vmatprep.mubr.msk.f32.mxu0 %vm291_vm4, %v28_v61 }
   0xf   :  { %273 = vperm.xlu0 %765, %v34_v17  }
  0x10   :  { %288 = vperm.xlu1 %766, %v37_v20  }
  0x13   :  { %283 = vperm.xlu0 %765, %v36_v19  }
  0x14   :  { %562 = vperm.xlu1 %766, %v39_v24  }
  0x17   :  { %557 = vperm.xlu0 %765, %v38_v23  }
  0x18   :  { %605 = vperm.xlu1 %766, %v600_v26  }
  0x1b   :  { %602 = vperm.xlu0 %765, %v599_v25  }
  0x1c   :  { %618 = vperm.xlu1 %766, %v41_v28  }
  0x1f   :  { %613 = vperm.xlu0 %765, %v40_v27  }
  0x82   :  { %v256_v33 = vpop.permute.xlu1 %255 }
  0x86   :  { %v246_v30 = vpop.permute.xlu0 %245 }
  0x87   :  { %v261_v47 = vpop.permute.xlu1 %260 }
  0x8a   :  { %v251_v38 = vpop.permute.xlu0 %250 }
  0x8b   :  { %v279_v0 = vpop.permute.xlu1 %278 }
  0x8e   :  { %v274_v1 = vpop.permute.xlu0 %273 }
  0x8f   :  { %v289_v7 = vpop.permute.xlu1 %288 }
  0x92   :  { %v284_v10 = vpop.permute.xlu0 %283 }
  0x93   :  { %v563_v24 = vpop.permute.xlu1 %562 }
  0x96   :  { %v558_v26 = vpop.permute.xlu0 %557 }
  0xd9   :  { %v690_v31 = vpop.f32.mrb[0].mxu1 }
  0xda   :  { %v224_v32 = vpop.f32.mrb[1].mxu1 }
  0xdc   :  { %v682_v34 = vpop.f32.mrb[0].mxu0 }
  0xdd   :  { %v230_v35 = vadd.f32 %v690_v31, %v682_v34  ;;  %v126_v36 = vpop.f32.mrb[1].mxu0  ;;  %v693_v37 = vpop.f32.mrb[2].mxu1 }
  0xde   :  { %v225_v39 = vadd.f32 %v224_v32, %v126_v36  ;;  %v234_v40 = vpop.f32.mrb[3].mxu1 }
  0xdf   :  { %v264_v41 = vadd.f32 %v251_v38, %v230_v35 }
  0xe0   :  { %v263_v42 = vadd.f32 %v246_v30, %v225_v39  ;;  %v685_v43 = vpop.f32.mrb[2].mxu0 }
  0xe1   :  { %v268_v44 = vmax.f32 %v264_v41, 0.0  ;;  %v240_v45 = vadd.f32 %v693_v37, %v685_v43  ;;  %v136_v46 = vpop.f32.mrb[3].mxu0 }
  0xe2   :  { %v267_v48 = vmax.f32 %v263_v42, 0.0  ;;  %v235_v49 = vadd.f32 %v234_v40, %v136_v46  ;;  %v742_v50 = vpack.c.bf16 %v264_v41, %v263_v42  ;;  %v606_v46 = vpop.permute.xlu1 %605 }
  0xe3   :  { %v266_v51 = vadd.f32 %v261_v47, %v240_v45  ;;  %vm608_vm7 = vcmp.eq.s32.totalorder %v606_v46, 1 }
  0xe4   :  { %v265_v52 = vadd.f32 %v256_v33, %v235_v49  ;;  %743 = vmatprep.subr.bf16.mxu0 %v742_v50  ;;  %v734_v53 = vpack.c.bf16 %v268_v44, %v267_v48  ;;  %v603_v48 = vpop.permute.xlu0 %602 }
  0xe5   :  { %v270_v54 = vmax.f32 %v266_v51, 0.0  ;;  %745 = vmatpush3.bf16.msra.mxu0 %v742_v50  ;;  %vm607_vm8 = vcmp.eq.s32.totalorder %v603_v48, 1 }
  0xe6   :  { %v269_v55 = vmax.f32 %v265_v52, 0.0  ;;  %735 = vmatprep.subr.bf16.mxu1 %v734_v53  ;;  %v746_v56 = vpack.c.bf16 %v266_v51, %v265_v52 }
  0xe7   :  { %737 = vmatpush3.bf16.msra.mxu1 %v734_v53 }
  0xe8   :  { %747 = vmatprep.subr.bf16.mxu0 %v746_v56  ;;  %v738_v57 = vpack.c.bf16 %v270_v54, %v269_v55  ;;  %v614_v61 = vpop.permute.xlu0 %613 }
  0xe9   :  { %749 = vmatpush3.bf16.msra.mxu0 %v746_v56 }
  0xea   :  { %739 = vmatprep.subr.bf16.mxu1 %v738_v57 }
  0xeb   :  { %741 = vmatpush3.bf16.msra.mxu1 %v738_v57 }
  0xec   :  { %717 = vmatmul.mubr.msk.f32.vlgmr.msra.gmra.mrb[4].mxu0 %vm291_vm4, %v29_v63 }
  0xee   :  { %703 = vmatmul.mubr.msk.f32.vlgmr.msra.gmra.mrb[4].mxu1 %vm291_vm4, %v23_v58 }
  0xef   :  { %705 = vmatprep.mubr.msk.f32.mxu1 %vm291_vm4, %v24_v59  ;;  %v619_v59 = vpop.permute.xlu1 %618 }
  0xf2   :  { %706 = vmatmul.mubr.msk.f32.gmra.mrb[6].mxu1 %vm291_vm4, %v25_v60 }
  0xf3   :  { %727 = vmatprep.mubr.msk.f32.mxu1 %vm291_vm4, %v26_v62 }
 0x1bf   :  { %v718_v19 = vpop.f32.mrb[4].mxu0 }
 0x1c0   :  { %v465_v20 = vpop.f32.mrb[5].mxu0 }
 0x1c1   :  { %v704_v2 = vpop.f32.mrb[4].mxu1 }
 0x1c2   :  { %v376_v3 = vadd.f32 %v704_v2, %v279_v0  ;;  %v370_v4 = vpop.f32.mrb[5].mxu1 }
 0x1c3   :  { %v371_v5 = vadd.f32 %v370_v4, %v274_v1 }
 0x1c4   :  { %v390_v6 = vmax.f32 %v376_v3, 0.0 }
 0x1c5   :  { %v389_v8 = vmax.f32 %v371_v5, 0.0  ;;  %v707_v9 = vpop.f32.mrb[6].mxu1 }
 0x1c6   :  { %v386_v11 = vadd.f32 %v707_v9, %v289_v7  ;;  %v380_v12 = vpop.f32.mrb[7].mxu1 }
 0x1c7   :  { %v750_v13 = vpack.c.bf16 %v390_v6, %v389_v8  ;;  %v381_v14 = vadd.f32 %v380_v12, %v284_v10 }
 0x1c8   :  { %v392_v15 = vmax.f32 %v386_v11, 0.0 }
 0x1c9   :  { %v391_v16 = vmax.f32 %v381_v14, 0.0  ;;  %751 = vmatprep.subr.bf16.mxu1 %v750_v13 }
 0x1ca   :  { %753 = vmatpush3.bf16.msra.mxu1 %v750_v13 }
 0x1cb   :  { %v754_v17 = vpack.c.bf16 %v392_v15, %v391_v16 }
 0x1cd   :  { %755 = vmatprep.subr.bf16.mxu1 %v754_v17 }
 0x1ce   :  { %757 = vmatpush3.bf16.msra.mxu1 %v754_v17 }
 0x1d1   :  { %728 = vmatmul.mubr.msk.f32.vlgmr.msra.gmra.mrb[8].mxu1 %vm291_vm4, %v27_v18 }
 0x2a4   :  { %v729_v21 = vpop.f32.mrb[8].mxu1 }
 0x2a5   :  { %v552_v22 = vadd.f32 %v729_v21, %v718_v19  ;;  %v546_v23 = vpop.f32.mrb[9].mxu1 }
 0x2a6   :  { %v547_v25 = vadd.f32 %v546_v23, %v465_v20 }
 0x2a7   :  { %v566_v27 = vadd.f32 %v563_v24, %v552_v22 }
 0x2a8   :  { %v565_v28 = vadd.f32 %v558_v26, %v547_v25 }
 0x2a9   :  { %v568_v29 = vand.u32 2147483647, %v566_v27  ;;  %v594_v51 = vmax.f32 %v566_v27, 0.0 }
 0x2aa   :  { %v567_v30 = vand.u32 2147483647, %v565_v28  ;;  %v593_v55 = vmax.f32 %v565_v28, 0.0 }
 0x2ab   :  { %v570_v31 = vsub.f32 0.0, %v568_v29 }
 0x2ac   :  { %v569_v32 = vsub.f32 0.0, %v567_v30 }
 0x2ad   :  { %v573_v33 = vmul.f32 1.442695, %v570_v31 }
 0x2ae   :  { %v571_v34 = vmul.f32 1.442695, %v569_v32 }
 0x2af   :  { %767 = vpow2.f32 %v573_v33 }
 0x2b0   :  { %769 = vpow2.f32 %v571_v34 }
 0x2b9   :  { %v768_v35 = vpop.eup %767 }
 0x2ba   :  { %v770_v36 = vpop.eup %769  ;;  %v584_v37 = vadd.f32 1.0, %v768_v35  ;;  %v587_v39 = vmul.f32 -0.5, %v768_v35  ;;  %v590_v42 = vand.u32 2147483647, %v768_v35 }
 0x2bb   :  { %v575_v38 = vadd.f32 1.0, %v770_v36  ;;  %v578_v40 = vmul.f32 -0.5, %v770_v36  ;;  %v581_v44 = vand.u32 2147483647, %v770_v36 }
 0x2bc   :  { %771 = vlog2.f32 %v584_v37  ;;  %v588_v41 = vadd.f32 1.0, %v587_v39  ;;  %vm591_vm5 = vcmp.lt.f32.partialorder %v590_v42, 0.0004427343 }
 0x2bd   :  { %773 = vlog2.f32 %v575_v38  ;;  %v579_v43 = vadd.f32 1.0, %v578_v40  ;;  %vm582_vm6 = vcmp.lt.f32.partialorder %v581_v44, 0.0004427343 }
 0x2be   :  { %v589_v50 = vmul.f32 %v768_v35, %v588_v41 }
 0x2bf   :  { %v580_v53 = vmul.f32 %v770_v36, %v579_v43 }
 0x2c6   :  { %v772_v45 = vpop.eup %771 }
 0x2c7   :  { %v774_v47 = vpop.eup %773  ;;  %v586_v49 = vmul.f32 0.6931472, %v772_v45 }
 0x2c8   :  { %v577_v52 = vmul.f32 0.6931472, %v774_v47 }
 0x2c9   :  { %v592_v54 = vsel %vm591_vm5, %v589_v50, %v586_v49 }
 0x2ca   :  { %v596_v56 = vadd.f32 %v594_v51, %v592_v54  ;;  %v583_v57 = vsel %vm582_vm6, %v580_v53, %v577_v52 }
 0x2cb   :  { %v595_v58 = vadd.f32 %v593_v55, %v583_v57 }
 0x2cc   :  { %v610_v60 = vsel %vm608_vm7, %v596_v56, %v566_v27 }
 0x2cd   :  { %v622_v62 = vadd.f32 %v619_v59, %v610_v60  ;;  %v609_v63 = vsel %vm607_vm8, %v595_v58, %v565_v28 }
 0x2ce   :  { %v621_v0 = vadd.f32 %v614_v61, %v609_v63 }
 0x2cf   :  { %624 = vst.msk [vmem:[%s922_s3 + $0x8] sm:$0xff] %vm145_vm0, %v622_v62 }
 0x2d0   :  { %623 = vst.msk [vmem:[%s922_s3] sm:$0xff] %vm145_vm0, %v621_v0 }

</bundles_post_ra>
